<compile_context>
chip_gen: v6e
topology: v6e:2x2x1
jax: 0.10.0
libtpu: 0.0.40
codegen_flags: <defaults>
</compile_context>

<pallas_src>
import functools
from typing import Any, NamedTuple

import jax
import jax.numpy as jnp
from jax.experimental import pallas as pl
from jax.experimental.pallas import tpu as pltpu

_MIB = 1024 * 1024


def _round_up(v, m):
    return ((v + m - 1) // m) * m


def _pad_lanes(n):
    # Lane-dense padding (multiple of 128).  Prefer 256-multiples (v6e/v7x
    # MXUs are 2x256x256) when the extra padding is small or n is large.
    p128 = _round_up(n, 128)
    p256 = _round_up(n, 256)
    return p256 if ((p256 - n) <= 64 or n >= 1024) else p128


def _tpu_generation():
    try:
        kind = jax.devices()[0].device_kind.lower()
    except Exception:
        return 0
    for g in (7, 6, 5, 4):
        if f"v{g}" in kind:
            return g
    return 0


def _tpu_vmem_bytes(gen):
    v = 0
    try:
        v = int(pltpu.get_tpu_info().vmem_capacity_bytes)
    except Exception:
        v = 0
    if v <= 0:
        v = 128 * _MIB if gen in (5, 6) else 64 * _MIB
    if gen >= 7:
        v = min(v, 64 * _MIB)          # v7x: 64 MiB per TensorCore
    return v


def _footprint_bytes(tm, th, nk, in_f, out_pad, csz, osz):
    """VMEM footprint model for one grid step (double-buffered tiles + temps)."""
    hh2 = 2 * th
    tiles = (
        2 * tm * in_f * csz            # x tile
        + 2 * in_f * hh2 * csz         # packed W1 block [A_k | B_k]
        + 2 * hh2 * 4                  # packed b1 (f32)
        + 2 * th * out_pad * csz       # W2 block
        + 2 * out_pad * 4              # b2 (f32)
        + 2 * tm * out_pad * osz       # output tile
    )
    temps = (
        tm * hh2 * 4                   # fc1 output h (f32)
        + 3 * tm * th * csz            # h1 / h2 (gate dtype) / g
        + 2 * tm * out_pad * 4         # fc2 partial + bias-added result (f32)
    )
    acc = 0 if nk == 1 else tm * out_pad * 4   # f32 accumulator scratch
    return tiles + temps + acc


class GluMlpPlan(NamedTuple):
    tm: int            # token tile
    th: int            # hidden (gate) tile, per GLU half
    hh_pad: int        # padded half size = nk * th
    nk: int            # number of hidden reduction steps
    out_pad: int       # lane-dense padded out_features
    in_f: int
    half: int
    out_f: int
    vmem_limit: int
    gate_dtype: Any
    compute_dtype: Any


_TM_CANDIDATES = (1024, 768, 512, 384, 256, 128, 64, 32, 16, 8)
_TH_CANDIDATES = (1024, 512, 256, 128)


def plan_glu_mlp(n_tokens, in_f, hidden, out_f, *,
                 compute_dtype=jnp.bfloat16, hidden_tile=None):
    assert hidden % 2 == 0, "GluMlp requires hidden_features % 2 == 0"
    half = hidden // 2
    cd = jnp.dtype(compute_dtype)
    csz = cd.itemsize
    osz = 4  # conservative (output dtype <= 4 bytes)

    gen = _tpu_generation()
    phys = _tpu_vmem_bytes(gen)
    # Generation-aware scoped-VMEM ceiling: ~109 MiB on 128-MiB parts
    # (v5e/v6e), ~52 MiB on v7x (64 MiB physical per TC, temporaries counted).
    cap = int(phys * (0.85 if phys >= 96 * _MIB else 0.82))
    budget = cap - 2 * _MIB            # headroom for Mosaic internal scratch

    # v6e/v7x VPU/EUP are bf16-capable: gate in bf16 there; f32 elsewhere.
    gate_dtype = cd if (gen >= 6 and cd == jnp.bfloat16) else jnp.dtype(jnp.float32)

    out_pad = _pad_lanes(out_f)
    n_pad8 = _round_up(max(n_tokens, 1), 8)
    # Prefer >= 2 token tiles so the "parallel" axis can shard across both
    # TensorCores on v7x (harmless on single-TC v5e/v6e).
    tm_cap = n_pad8 if n_pad8 <= 256 else _round_up(-(-n_pad8 // 2), 8)

    def _mk(tm, th, nk, hh_pad):
        fp = _footprint_bytes(tm, th, nk, in_f, out_pad, csz, osz)
        vmem_limit = int(min(cap, max(fp + 4 * _MIB, 32 * _MIB)))
        return GluMlpPlan(tm, th, hh_pad, nk, out_pad, in_f, half, out_f,
                          vmem_limit, gate_dtype, cd)

    if hidden_tile is None:
        # 1) Weight-resident mode: the whole (padded) weight set stays in VMEM
        #    (DMA'd once total), only activations stream.  Single reduction step.
        hh_res = _pad_lanes(half)
        tm_floor = min(256, tm_cap)
        for tm in _TM_CANDIDATES:
            tm_e = min(tm, tm_cap)
            if tm_e < tm_floor:
                break
            if _footprint_bytes(tm_e, hh_res, 1, in_f, out_pad, csz, osz) <= budget:
                return _mk(tm_e, hh_res, 1, hh_res)
        th_list = _TH_CANDIDATES
    else:
        assert hidden_tile % 128 == 0, "hidden_tile must be a multiple of 128"
        th_list = (int(hidden_tile),)

    # 2) Streamed (k-tiled) mode: weights re-stream once per token tile, so use
    #    a large token tile (arithmetic intensity ~ tm FLOP/byte of weights):
    #    ridge ~670 FLOP/B on v6e (needs tm~768-1024), ~310 on v7x (tm~384-512).
    tm_pref = 1024 if phys >= 96 * _MIB else 512
    for tm in _TM_CANDIDATES:
        if tm > tm_pref:
            continue
        tm_e = min(tm, tm_cap)
        for th in th_list:
            hh_k = _round_up(half, th)
            nk = hh_k // th
            if _footprint_bytes(tm_e, th, nk, in_f, out_pad, csz, osz) <= budget:
                return _mk(tm_e, th, nk, hh_k)

    # TODO(synk): add an in_features (contraction) tiling path for very large
    # in_f (>= ~8K) which currently cannot fit the v7x VMEM budget.
    raise ValueError("glu_mlp: no tiling fits the VMEM budget "
                     f"(in_f={in_f}, half={half}, out_f={out_f})")


def prepare_glu_mlp_params(w1, b1, w2, b2, plan):
    """One-time packing of GluMlp weights (hoisted out of the hot path).

    w1: (in_f, hidden)   fc1 weight stored transposed for x @ W.
    b1: (hidden,)        fc1 bias.
    w2: (hidden//2, out) fc2 weight, transposed.
    b2: (out,)           fc2 bias.
    """
    cd = plan.compute_dtype
    in_f, half, th, hh, nk = plan.in_f, plan.half, plan.th, plan.hh_pad, plan.nk
    out_pad, out_f = plan.out_pad, plan.out_f
    assert w1.shape == (in_f, 2 * half) and b1.shape == (2 * half,)
    assert w2.shape == (half, out_f) and b2.shape == (out_f,)
    f32 = jnp.float32

    # Split W1 into the two GLU halves, zero-pad the hidden axis, and
    # interleave per k-block so one (in_f, 2*th) block holds [A_k | B_k].
    w1a = jnp.zeros((in_f, hh), cd).at[:, :half].set(w1[:, :half].astype(cd))
    w1b = jnp.zeros((in_f, hh), cd).at[:, :half].set(w1[:, half:].astype(cd))
    w1p = jnp.concatenate(
        [w1a.reshape(in_f, nk, 1, th), w1b.reshape(in_f, nk, 1, th)],
        axis=2).reshape(in_f, nk * 2 * th)

    b1a = jnp.zeros((hh,), f32).at[:half].set(b1[:half].astype(f32))
    b1b = jnp.zeros((hh,), f32).at[:half].set(b1[half:].astype(f32))
    b1p = jnp.concatenate(
        [b1a.reshape(nk, 1, th), b1b.reshape(nk, 1, th)],
        axis=1).reshape(1, nk * 2 * th)

    # Padded hidden columns produce g = (0)*sigmoid(0) = 0 and also hit zero
    # rows of W2, so they contribute nothing; padded output lanes are sliced.
    w2p = jnp.zeros((hh, out_pad), cd).at[:half, :out_f].set(w2.astype(cd))
    b2p = jnp.zeros((1, out_pad), f32).at[0, :out_f].set(b2.astype(f32))
    return (w1p, b1p, w2p, b2p)


def _glu_kernel_resident(x_ref, w1_ref, b1_ref, w2_ref, b2_ref, o_ref, *,
                         gate_dtype):
    # Single reduction step: whole weight set resident, no scratch needed.
    th = w2_ref.shape[0]
    h = jnp.dot(x_ref[...], w1_ref[...],
                preferred_element_type=jnp.float32) + b1_ref[...]
    h1 = h[:, :th].astype(gate_dtype)
    h2 = h[:, th:].astype(gate_dtype)
    g = (h1 * jax.nn.sigmoid(h2)).astype(w2_ref.dtype)   # gate_last=True
    y = jnp.dot(g, w2_ref[...], preferred_element_type=jnp.float32) + b2_ref[...]
    o_ref[...] = y.astype(o_ref.dtype)


def _glu_kernel_ktiled(x_ref, w1_ref, b1_ref, w2_ref, b2_ref, o_ref, acc_ref, *,
                       gate_dtype):
    k = pl.program_id(1)
    th = w2_ref.shape[0]
    h = jnp.dot(x_ref[...], w1_ref[...],
                preferred_element_type=jnp.float32) + b1_ref[...]
    h1 = h[:, :th].astype(gate_dtype)
    h2 = h[:, th:].astype(gate_dtype)
    g = (h1 * jax.nn.sigmoid(h2)).astype(w2_ref.dtype)
    part = jnp.dot(g, w2_ref[...], preferred_element_type=jnp.float32)

    @pl.when(k == 0)
    def _():
        acc_ref[...] = part           # init with first partial (no zero-fill)

    @pl.when(k > 0)
    def _():
        acc_ref[...] += part

    @pl.when(k == pl.num_programs(1) - 1)
    def _():
        o_ref[...] = (acc_ref[...] + b2_ref[...]).astype(o_ref.dtype)


def glu_mlp_prepared(x, params, plan):
    """GluMlp forward with pre-packed params.  x: (N, in_f) tokens-major."""
    w1p, b1p, w2p, b2p = params
    N, in_f = x.shape
    assert in_f == plan.in_f
    cd = plan.compute_dtype
    out_dtype = x.dtype
    tm, th, nk, out_pad = plan.tm, plan.th, plan.nk, plan.out_pad

    n_pad = _round_up(max(N, 1), tm)
    if n_pad == N and x.dtype == cd:
        x_p = x                        # no repacking copy needed
    else:
        x_p = jnp.zeros((n_pad, in_f), cd).at[:N].set(x.astype(cd))

    if nk == 1:
        kernel = functools.partial(_glu_kernel_resident, gate_dtype=plan.gate_dtype)
        grid = (n_pad // tm,)
        in_specs = [
            pl.BlockSpec((tm, in_f), lambda i: (i, 0)),        # x
            pl.BlockSpec((in_f, 2 * th), lambda i: (0, 0)),    # packed W1 [A|B]
            pl.BlockSpec((1, 2 * th), lambda i: (0, 0)),       # packed b1
            pl.BlockSpec((th, out_pad), lambda i: (0, 0)),     # W2
            pl.BlockSpec((1, out_pad), lambda i: (0, 0)),      # b2
        ]
        out_specs = pl.BlockSpec((tm, out_pad), lambda i: (i, 0))
        scratch_shapes = ()
        dimsem = ("parallel",)
    else:
        kernel = functools.partial(_glu_kernel_ktiled, gate_dtype=plan.gate_dtype)
        grid = (n_pad // tm, nk)
        in_specs = [
            pl.BlockSpec((tm, in_f), lambda i, k: (i, 0)),     # x
            pl.BlockSpec((in_f, 2 * th), lambda i, k: (0, k)), # packed W1 block k
            pl.BlockSpec((1, 2 * th), lambda i, k: (0, k)),    # packed b1 block k
            pl.BlockSpec((th, out_pad), lambda i, k: (k, 0)),  # W2 block k
            pl.BlockSpec((1, out_pad), lambda i, k: (0, 0)),   # b2
        ]
        out_specs = pl.BlockSpec((tm, out_pad), lambda i, k: (i, 0))
        scratch_shapes = (pltpu.VMEM((tm, out_pad), jnp.float32),)
        dimsem = ("parallel", "arbitrary")

    out = pl.pallas_call(
        kernel,
        out_shape=jax.ShapeDtypeStruct((n_pad, out_pad), out_dtype),
        grid_spec=pltpu.PrefetchScalarGridSpec(
            num_scalar_prefetch=0,
            grid=grid,
            in_specs=in_specs,
            out_specs=out_specs,
            scratch_shapes=scratch_shapes,
        ),
        compiler_params=pltpu.CompilerParams(
            dimension_semantics=dimsem,
            vmem_limit_bytes=plan.vmem_limit,
        ),
    )(x_p, w1p, b1p, w2p, b2p)

    return out[:N, :plan.out_f]


def glu_mlp(x, w1, b1, w2, b2, *, compute_dtype=jnp.bfloat16, hidden_tile=None):
    """Convenience wrapper: plan + (one-time) prep + run.  x: (N, in_f)."""
    N, in_f = x.shape
    hidden = w1.shape[1]
    out_f = w2.shape[1]
    assert hidden % 2 == 0 and w2.shape[0] == hidden // 2
    plan = plan_glu_mlp(N, in_f, hidden, out_f,
                        compute_dtype=compute_dtype, hidden_tile=hidden_tile)
    params = prepare_glu_mlp_params(w1, b1, w2, b2, plan)
    return glu_mlp_prepared(x, params, plan)


def glu_mlp_ref(x, w1, b1, w2, b2):
    h = x @ w1 + b1
    half = h.shape[-1] // 2
    return (h[:, :half] * jax.nn.sigmoid(h[:, half:])) @ w2 + b2


if __name__ == "__main__":
    # Small shapes consistent with the module: batch=2, seq=8 tokens,
    # in_features=32, hidden_features=64 (even), out_features=32.
    batch, seq = 2, 8
    in_features, hidden_features, out_features = 32, 64, 32

    key = jax.random.PRNGKey(0)
    kx, kw1, kb1, kw2, kb2 = jax.random.split(key, 5)

    x = jax.random.normal(kx, (batch, seq, in_features), dtype=jnp.float32)
    # PyTorch Linear weights are (out, in); stored transposed (in, out) here.
    w1 = jax.random.normal(kw1, (in_features, hidden_features), jnp.float32) * 0.02
    b1 = jax.random.normal(kb1, (hidden_features,), jnp.float32) * 0.01
    w2 = jax.random.normal(kw2, (hidden_features // 2, out_features), jnp.float32) * 0.02
    b2 = jax.random.normal(kb2, (out_features,), jnp.float32) * 0.01

    # Flatten leading dims to tokens for the kernel, restore afterwards.
    x2d = x.reshape(batch * seq, in_features)
    ref = glu_mlp_ref(x2d, w1, b1, w2, b2)

    # f32 compute path (weight-resident, single reduction step): strict check.
    out_f32 = glu_mlp(x2d, w1, b1, w2, b2, compute_dtype=jnp.float32)
    jax.block_until_ready(out_f32)
    assert jnp.allclose(out_f32, ref, atol=2e-5, rtol=2e-5), "f32 mismatch vs ref"

    # bf16 MXU path (default / fast): looser tolerance vs the f32 reference.
    out_bf16 = glu_mlp(x2d, w1, b1, w2, b2)
    jax.block_until_ready(out_bf16)
    assert jnp.allclose(out_bf16, ref, atol=5e-3, rtol=5e-2), "bf16 mismatch vs ref"

    # Also exercise the k-tiled (streamed) kernel path: larger hidden dim with
    # a forced hidden tile so the reduction grid axis has more than one step.
    hidden_big = 512
    kw1b, kb1b, kw2b = jax.random.split(kw2, 3)
    w1_big = jax.random.normal(kw1b, (in_features, hidden_big), jnp.float32) * 0.02
    b1_big = jax.random.normal(kb1b, (hidden_big,), jnp.float32) * 0.01
    w2_big = jax.random.normal(kw2b, (hidden_big // 2, out_features), jnp.float32) * 0.02
    ref_big = glu_mlp_ref(x2d, w1_big, b1_big, w2_big, b2)
    out_big = glu_mlp(x2d, w1_big, b1_big, w2_big, b2,
                      compute_dtype=jnp.float32, hidden_tile=128)
    jax.block_until_ready(out_big)
    assert jnp.allclose(out_big, ref_big, atol=2e-5, rtol=2e-5), "k-tiled mismatch vs ref"

    out = out_bf16.reshape(batch, seq, out_features)
    jax.block_until_ready(out)

    # TODO(synk): dropout is a no-op at drop=0.0 (module default); norm_layer=None -> Identity.
    print("KERNEL_OK")
</pallas_src>

<mosaic_0001>
module attributes {stable_mosaic.version = 11 : i64} {
  func.func @_glu_kernel_resident(%arg0: i32, %arg1: memref<16x32xf32, #tpu.memory_space<vmem>>, %arg2: memref<32x256xf32, #tpu.memory_space<vmem>>, %arg3: memref<1x256xf32, #tpu.memory_space<vmem>>, %arg4: memref<128x128xf32, #tpu.memory_space<vmem>>, %arg5: memref<1x128xf32, #tpu.memory_space<vmem>>, %arg6: memref<16x128xf32, #tpu.memory_space<vmem>>) attributes {dimension_semantics = [#tpu.dimension_semantics<parallel>], iteration_bounds = array<i64: 1>, scalar_prefetch = 0 : i64, scratch_operands = 0 : i64, tpu.core_type = #tpu.core_type<tc>, window_params = [{transform_indices = @transform_0, window_bounds = array<i64: 16, 32>}, {pipeline_mode = #tpu.pipeline_mode<synchronous>, transform_indices = @transform_1, window_bounds = array<i64: 32, 256>}, {pipeline_mode = #tpu.pipeline_mode<synchronous>, transform_indices = @transform_2, window_bounds = array<i64: 1, 256>}, {pipeline_mode = #tpu.pipeline_mode<synchronous>, transform_indices = @transform_3, window_bounds = array<i64: 128, 128>}, {pipeline_mode = #tpu.pipeline_mode<synchronous>, transform_indices = @transform_4, window_bounds = array<i64: 1, 128>}, {transform_indices = @transform_5, window_bounds = array<i64: 16, 128>}]} {
    %c0 = arith.constant 0 : index
    %c0_0 = arith.constant 0 : index
    %0 = vector.load %arg1[%c0, %c0_0] : memref<16x32xf32, #tpu.memory_space<vmem>>, vector<16x32xf32>
    %c0_1 = arith.constant 0 : index
    %c0_2 = arith.constant 0 : index
    %1 = vector.load %arg2[%c0_1, %c0_2] : memref<32x256xf32, #tpu.memory_space<vmem>>, vector<32x256xf32>
    %cst = arith.constant dense<0.000000e+00> : vector<16x256xf32>
    %2 = tpu.matmul %0, %1, %cst {dimension_numbers = #tpu.dot_dimension_numbers<[1], [0], [0], [1], [0, 0, 1, 1], [], []>} : vector<16x32xf32>, vector<32x256xf32>, vector<16x256xf32> -> vector<16x256xf32>
    %c0_3 = arith.constant 0 : index
    %c0_4 = arith.constant 0 : index
    %3 = vector.load %arg3[%c0_3, %c0_4] : memref<1x256xf32, #tpu.memory_space<vmem>>, vector<1x256xf32>
    %4 = vector.broadcast %3 : vector<1x256xf32> to vector<16x256xf32>
    %5 = arith.addf %2, %4 : vector<16x256xf32>
    %6 = vector.extract_strided_slice %5 {offsets = [0, 0], sizes = [16, 128], strides = [1, 1]} : vector<16x256xf32> to vector<16x128xf32>
    %7 = vector.extract_strided_slice %5 {offsets = [0, 128], sizes = [16, 128], strides = [1, 1]} : vector<16x256xf32> to vector<16x128xf32>
    %8 = arith.negf %7 : vector<16x128xf32>
    %9 = math.exp %8 : vector<16x128xf32>
    %cst_5 = arith.constant 1.000000e+00 : f32
    %10 = vector.broadcast %cst_5 : f32 to vector<16x128xf32>
    %11 = arith.addf %10, %9 : vector<16x128xf32>
    %12 = arith.divf %10, %11 : vector<16x128xf32>
    %13 = arith.mulf %6, %12 : vector<16x128xf32>
    %c0_6 = arith.constant 0 : index
    %c0_7 = arith.constant 0 : index
    %14 = vector.load %arg4[%c0_6, %c0_7] : memref<128x128xf32, #tpu.memory_space<vmem>>, vector<128x128xf32>
    %cst_8 = arith.constant dense<0.000000e+00> : vector<16x128xf32>
    %15 = tpu.matmul %13, %14, %cst_8 {dimension_numbers = #tpu.dot_dimension_numbers<[1], [0], [0], [1], [0, 0, 1, 1], [], []>} : vector<16x128xf32>, vector<128x128xf32>, vector<16x128xf32> -> vector<16x128xf32>
    %c0_9 = arith.constant 0 : index
    %c0_10 = arith.constant 0 : index
    %16 = vector.load %arg5[%c0_9, %c0_10] : memref<1x128xf32, #tpu.memory_space<vmem>>, vector<1x128xf32>
    %17 = vector.broadcast %16 : vector<1x128xf32> to vector<16x128xf32>
    %18 = arith.addf %15, %17 : vector<16x128xf32>
    %c0_11 = arith.constant 0 : index
    %c0_12 = arith.constant 0 : index
    %19 = vector.load %arg6[%c0_11, %c0_12] : memref<16x128xf32, #tpu.memory_space<vmem>>, vector<16x128xf32>
    tpu.vector_store %arg6[%c0_11, %c0_12], %18 {strides = array<i32>} : memref<16x128xf32, #tpu.memory_space<vmem>>, vector<16x128xf32>,
    return
  }
  func.func @transform_0(%arg0: i32) -> (i32, i32) {
    %c0_i32 = arith.constant 0 : i32
    %c0_i32_0 = arith.constant 0 : i32
    return %arg0, %c0_i32 : i32, i32
  }
  func.func @transform_1(%arg0: i32) -> (i32, i32) {
    %c0_i32 = arith.constant 0 : i32
    %c0_i32_0 = arith.constant 0 : i32
    %c0_i32_1 = arith.constant 0 : i32
    return %c0_i32, %c0_i32_0 : i32, i32
  }
  func.func @transform_2(%arg0: i32) -> (i32, i32) {
    %c0_i32 = arith.constant 0 : i32
    %c0_i32_0 = arith.constant 0 : i32
    %c0_i32_1 = arith.constant 0 : i32
    return %c0_i32, %c0_i32_0 : i32, i32
  }
  func.func @transform_3(%arg0: i32) -> (i32, i32) {
    %c0_i32 = arith.constant 0 : i32
    %c0_i32_0 = arith.constant 0 : i32
    %c0_i32_1 = arith.constant 0 : i32
    return %c0_i32, %c0_i32_0 : i32, i32
  }
  func.func @transform_4(%arg0: i32) -> (i32, i32) {
    %c0_i32 = arith.constant 0 : i32
    %c0_i32_0 = arith.constant 0 : i32
    %c0_i32_1 = arith.constant 0 : i32
    return %c0_i32, %c0_i32_0 : i32, i32
  }
  func.func @transform_5(%arg0: i32) -> (i32, i32) {
    %c0_i32 = arith.constant 0 : i32
    %c0_i32_0 = arith.constant 0 : i32
    return %arg0, %c0_i32 : i32, i32
  }
}

</mosaic_0001>

<bundles_post_ra>
// kernel: tpu_custom_call.1
= control target key start
LH: loop header
LB: loop body
LE: loop exit
PB: predicated region body
PF: predicated region fallthrough
CT: control target
= control target key end

     0   :  { %10 = vsyncpa [#allocation3], 0  ;;  %s527_s0 = inlined_call_operand.hbm [shape: f32[16,32], index: 0, kind: input, shape index: {}]   ;;  %s528_s1 = inlined_call_operand.hbm [shape: f32[32,256], index: 1, kind: input, shape index: {}]   ;;  %s529_s2 = inlined_call_operand.vmem [shape: f32[1,256], index: 2, kind: input, shape index: {}]   ;;  %s530_s3 = inlined_call_operand.hbm [shape: f32[128,128], index: 3, kind: input, shape index: {}]   ;;  %s531_s4 = inlined_call_operand.vmem [shape: f32[1,128], index: 4, kind: input, shape index: {}]   ;;  %s532_s5 = inlined_call_operand.hbm [shape: f32[16,128], index: 5, kind: output, shape index: {}]  }
   0x1   :  { %11 = vsyncpa [#allocation6], 0 }
   0x2   :  { %12 = vsyncpa [#allocation4], 0  ;;  %s461_s18 = smov [#allocation5]  }
   0x3   :  { %s30_s19 = sshll.u32 %s461_s18, 4  ;;  %s31_s19 = int_to_ptr.vmem [resolvable:$true] %s30_s19 }
   0x4   :  { %s383_s20 = scalar_lea.vmem %s31_s19, 1024  ;;  %p388_p1 = scmp.lt.s32.totalorder %s31_s19, %s31_s19 }
   0x5   :  { %p384_p0 = scmp.ne.s32.totalorder %s31_s19, %s383_s20  ;;  %p389_p2 = scmp.lt.s32.totalorder %s383_s20, %s383_s20 }
   0x7   :  { %p390_p3 = por %p389_p2, %p388_p1 }
   0x9   :  { %p391_p4 = pnand %p390_p3, %p384_p0 }
   0xb   :  { %394 = shalt.err (!%p391_p4)
}
   0xc   :  { %s462_s21 = smov 256   ;;  %s463_s22 = smov 16  }
   0xd   :  { %36 = dma.hbm_to_vmem [thread:$0]  %s528_s1, 1024, %s31_s19, [#allocation6], %s462_s21, %s462_s21, %s463_s22  }
   0xe   :  { %s464_s25 = smov [#allocation2]  }
   0xf   :  { %s18_s26 = sshll.u32 %s464_s25, 4  ;;  %s19_s26 = int_to_ptr.vmem [resolvable:$true] %s18_s26 }
  0x10   :  { %s403_s27 = scalar_lea.vmem %s19_s26, 256  ;;  %p408_p6 = scmp.lt.s32.totalorder %s19_s26, %s19_s26 }
  0x11   :  { %p404_p5 = scmp.ne.s32.totalorder %s19_s26, %s403_s27  ;;  %p409_p7 = scmp.lt.s32.totalorder %s403_s27, %s403_s27 }
  0x13   :  { %p410_p8 = por %p409_p7, %p408_p6 }
  0x15   :  { %p411_p9 = pnand %p410_p8, %p404_p5 }
  0x17   :  { %414 = shalt.err (!%p411_p9)
}
  0x18   :  { %s465_s28 = smov 128   ;;  %s466_s29 = smov 8  }
  0x19   :  { %24 = dma.hbm_to_vmem [thread:$0]  %s527_s0, 256, %s19_s26, [#allocation3], %s465_s28, %s465_s28, %s466_s29  }
  0x1a   :  { %s467_s1 = smov [#allocation7]  }
  0x1b   :  { %s44_s7 = sshll.u32 %s467_s1, 4  ;;  %s45_s7 = int_to_ptr.vmem [resolvable:$true] %s44_s7 }
  0x1c   :  { %s423_s8 = scalar_lea.vmem %s45_s7, 2048  ;;  %p428_p11 = scmp.lt.s32.totalorder %s45_s7, %s45_s7 }
  0x1d   :  { %p424_p10 = scmp.ne.s32.totalorder %s45_s7, %s423_s8  ;;  %p429_p12 = scmp.lt.s32.totalorder %s423_s8, %s423_s8 }
  0x1f   :  { %p430_p13 = por %p429_p12, %p428_p11 }
  0x21   :  { %p431_p0 = pnand %p430_p13, %p424_p10 }
  0x23   :  { %434 = shalt.err (!%p431_p0)
}
  0x24   :  { %50 = dma.hbm_to_vmem [thread:$0]  %s530_s3, 2048, %s45_s7, [#allocation6], %s465_s28, %s465_s28, %s466_s29  }
  0x25   :  { %455 = dma.done.wait [#allocation3], 256  }
  0x26   :  { %456 = vsyncadd [#allocation3], 4294967040 }
  0x27   :  { %457 = dma.done.wait [#allocation6], 3072  }
  0x28   :  { %458 = vsyncadd [#allocation6], 4294964224  ;;  %v468_v0 = vmov 0.0   ;;  %v71_v1 = vld [vmem:[#allocation5 + $0x38] sm:$0xff]  ;;  %v70_v2 = vld [vmem:[#allocation5 + $0x30] sm:$0xff]  ;;  %vm84_vm0 = vcmask 261120   ;;  %v74_v27 = vlaneseq }
  0x29   :  { %155 = vmatprep.mubr.f32.mxu0 %v468_v0  ;;  %v69_v3 = vld [vmem:[#allocation5 + $0x28] sm:$0xff]  ;;  %115 = vmatprep.subr.mxu0 %v71_v1  ;;  %v68_v4 = vld [vmem:[#allocation5 + $0x20] sm:$0xff]  ;;  %v67_v5 = vld [vmem:[#allocation5 + $0x18] sm:$0xff]  ;;  %s469_s12 = smov [#allocation8]  }
  0x2a   :  { %116 = vmatpush1.msra.mxu0 %v70_v2  ;;  %v66_v6 = vld [vmem:[#allocation5 + $0x10] sm:$0xff]  ;;  %v65_v7 = vld [vmem:[#allocation5 + $0x8] sm:$0xff]  ;;  %v64_v8 = vld [vmem:[#allocation5] sm:$0xff]  ;;  %v75_v28 = vshrl.u32 %v74_v27, 7  ;;  %s287_s13 = sshll.u32 %s469_s12, 4  ;;  %s288_s13 = int_to_ptr.vmem [resolvable:$true] %s287_s13 }
  0x2b   :  { %117 = vmatprep.subr.mxu0 %v69_v3  ;;  %v62_v9 = vld [vmem:[#allocation2] sm:$0xff]  ;;  %v63_v10 = vld [vmem:[#allocation2 + $0x8] sm:$0xff]  ;;  %v195_v13 = vld [vmem:[#allocation7 + $0x68] sm:$0xff]  ;;  %s435_s14 = scalar_lea.vmem %s288_s13, 256  ;;  %p440_p2 = scmp.lt.s32.totalorder %s288_s13, %s288_s13 }
  0x2c   :  { %118 = vmatpush1.msra.mxu0 %v68_v4  ;;  %v197_v11 = vld [vmem:[#allocation7 + $0x78] sm:$0xff]  ;;  %v196_v12 = vld [vmem:[#allocation7 + $0x70] sm:$0xff]  ;;  %v194_v14 = vld [vmem:[#allocation7 + $0x60] sm:$0xff]  ;;  %v80_v29 = vsub.s32 1, %v75_v28  ;;  %v76_v44 = vsub.s32 0, %v75_v28  ;;  %p436_p1 = scmp.ne.s32.totalorder %s288_s13, %s435_s14  ;;  %p441_p3 = scmp.lt.s32.totalorder %s435_s14, %s435_s14 }
  0x2d   :  { %119 = vmatprep.subr.mxu0 %v67_v5  ;;  %323 = vmatprep.subr.mxu1 %v197_v11  ;;  %v193_v15 = vld [vmem:[#allocation7 + $0x58] sm:$0xff]  ;;  %v192_v16 = vld [vmem:[#allocation7 + $0x50] sm:$0xff]  ;;  %v191_v17 = vld [vmem:[#allocation7 + $0x48] sm:$0xff] }
  0x2e   :  { %120 = vmatpush1.msra.mxu0 %v66_v6  ;;  %324 = vmatpush3.msra.mxu1 %v197_v11  ;;  %v190_v18 = vld [vmem:[#allocation7 + $0x40] sm:$0xff]  ;;  %v189_v19 = vld [vmem:[#allocation7 + $0x38] sm:$0xff]  ;;  %v188_v20 = vld [vmem:[#allocation7 + $0x30] sm:$0xff]  ;;  %p442_p4 = por %p441_p3, %p440_p2 }
  0x2f   :  { %121 = vmatprep.subr.mxu0 %v65_v7  ;;  %325 = vmatprep.subr.mxu1 %v196_v12  ;;  %v187_v21 = vld [vmem:[#allocation7 + $0x28] sm:$0xff]  ;;  %v186_v22 = vld [vmem:[#allocation7 + $0x20] sm:$0xff]  ;;  %v185_v23 = vld [vmem:[#allocation7 + $0x18] sm:$0xff] }
  0x30   :  { %122 = vmatpush1.msra.mxu0 %v64_v8  ;;  %326 = vmatpush3.msra.mxu1 %v196_v12  ;;  %v184_v24 = vld [vmem:[#allocation7 + $0x10] sm:$0xff]  ;;  %v183_v25 = vld [vmem:[#allocation7 + $0x8] sm:$0xff]  ;;  %v182_v26 = vld [vmem:[#allocation7] sm:$0xff]  ;;  %p443_p5 = pnand %p442_p4, %p436_p1 }
  0x31   :  { %300 = vmatmul.mubr.msk.f32.vlgmr.msra.gmra.mxu0 %vm84_vm0, %v62_v9  ;;  %327 = vmatprep.subr.mxu1 %v195_v13  ;;  %v72_v30 = vld [vmem:[%s529_s2] sm:$0x3] }
  0x32   :  { %161 = vmatprep.mubr.f32.mxu0 %v468_v0  ;;  %328 = vmatpush3.msra.mxu1 %v195_v13  ;;  %v81_v31 = vrot.slane %v72_v30, %v80_v29  ;;  %v77_v45 = vrot.slane %v72_v30, %v76_v44  ;;  %v304_v52 = vld [vmem:[%s531_s4] ss:$0 sm:$0xff] }
  0x33   :  { %329 = vmatprep.subr.mxu1 %v194_v14 }
  0x34   :  { %330 = vmatpush3.msra.mxu1 %v194_v14 }
  0x35   :  { %301 = vmatmul.mubr.msk.f32.gmra.mxu0 %vm84_vm0, %v63_v10  ;;  %331 = vmatprep.subr.mxu1 %v193_v15 }
  0x36   :  { %332 = vmatpush3.msra.mxu1 %v193_v15 }
  0x37   :  { %333 = vmatprep.subr.mxu1 %v192_v16 }
  0x38   :  { %334 = vmatpush3.msra.mxu1 %v192_v16 }
  0x39   :  { %335 = vmatprep.subr.mxu1 %v191_v17 }
  0x3a   :  { %336 = vmatpush3.msra.mxu1 %v191_v17 }
  0x3b   :  { %337 = vmatprep.subr.mxu1 %v190_v18 }
  0x3c   :  { %338 = vmatpush3.msra.mxu1 %v190_v18 }
  0x3d   :  { %339 = vmatprep.subr.mxu1 %v189_v19 }
  0x3e   :  { %340 = vmatpush3.msra.mxu1 %v189_v19 }
  0x3f   :  { %341 = vmatprep.subr.mxu1 %v188_v20 }
  0x40   :  { %342 = vmatpush3.msra.mxu1 %v188_v20 }
  0x41   :  { %343 = vmatprep.subr.mxu1 %v187_v21 }
  0x42   :  { %344 = vmatpush3.msra.mxu1 %v187_v21 }
  0x43   :  { %345 = vmatprep.subr.mxu1 %v186_v22 }
  0x44   :  { %346 = vmatpush3.msra.mxu1 %v186_v22 }
  0x45   :  { %347 = vmatprep.subr.mxu1 %v185_v23 }
  0x46   :  { %348 = vmatpush3.msra.mxu1 %v185_v23 }
  0x47   :  { %349 = vmatprep.subr.mxu1 %v184_v24 }
  0x48   :  { %350 = vmatpush3.msra.mxu1 %v184_v24 }
  0x49   :  { %351 = vmatprep.subr.mxu1 %v183_v25 }
  0x4a   :  { %352 = vmatpush3.msra.mxu1 %v183_v25 }
  0x4b   :  { %353 = vmatprep.subr.mxu1 %v182_v26 }
  0x4c   :  { %354 = vmatpush3.msra.mxu1 %v182_v26 }
  0xf1   :  { %v157_v32 = vpop.f32.mrf.mxu0 }
  0xf2   :  { %v158_v46 = vadd.f32 %v157_v32, %v77_v45 }
  0xf3   :  { %v159_v33 = vpop.f32.mrf.mxu0 }
  0xf4   :  { %v160_v34 = vadd.f32 %v159_v33, %v81_v31 }
  0xf5   :  { %v163_v35 = vpop.f32.mrf.mxu0 }
  0xf6   :  { %v302_v36 = vmul.f32 -1.442695, %v160_v34  ;;  %v164_v49 = vadd.f32 %v163_v35, %v77_v45 }
  0xf7   :  { %v165_v37 = vpop.f32.mrf.mxu0 }
  0xf8   :  { %367 = vpow2.f32 %v302_v36  ;;  %v166_v38 = vadd.f32 %v165_v37, %v81_v31 }
  0xfa   :  { %v303_v39 = vmul.f32 -1.442695, %v166_v38 }
  0xfc   :  { %369 = vpow2.f32 %v303_v39 }
 0x105   :  { %v368_v40 = vpop.eup %367 }
 0x106   :  { %v174_v41 = vadd.f32 1.0, %v368_v40 }
 0x108   :  { %371 = vrcp.f32 %v174_v41 }
 0x109   :  { %v370_v42 = vpop.eup %369 }
 0x10a   :  { %v175_v43 = vadd.f32 1.0, %v370_v42 }
 0x10c   :  { %373 = vrcp.f32 %v175_v43 }
 0x115   :  { %v372_v47 = vpop.eup %371 }
 0x116   :  { %v180_v48 = vmul.f32 %v372_v47, %v158_v46 }
 0x118   :  { %355 = vmatprep.mubr.f32.mxu1 %v180_v48 }
 0x119   :  { %v374_v50 = vpop.eup %373 }
 0x11a   :  { %v181_v51 = vmul.f32 %v374_v50, %v164_v49 }
 0x11c   :  { %356 = vmatmul.mubr.f32.vlgmr.msra.gmra.mxu1 %v181_v51 }
 0x1dc   :  { %v357_v53 = vpop.f32.mrf.mxu1 }
 0x1dd   :  { %v277_v54 = vadd.f32 %v357_v53, %v304_v52 }
 0x1de   :  { %v271_v55 = vpop.f32.mrf.mxu1 }
 0x1df   :  { %281 = vst [vmem:[#allocation8 + $0x8] sm:$0xff] %v277_v54  ;;  %v272_v56 = vadd.f32 %v304_v52, %v271_v55 }
 0x1e1   :  { %280 = vst [vmem:[#allocation8] sm:$0xff] %v272_v56 }
 0x1e2   :  { %446 = shalt.err (!%p443_p5)
}
 0x1e3   :  { %293 = dma.vmem_to_hbm [thread:$0]  %s288_s13, 256, %s532_s5, [#allocation4], %s465_s28, %s465_s28, %s466_s29  }
 0x1e4   :  { %459 = dma.done.wait [#allocation4], 256  }
 0x1e5   :  { %460 = vsyncadd [#allocation4], 4294967040 }
 0x1e6   :  { %297 = vsyncpa [#allocation3], 1 }
 0x1e7   :  { %298 = vsyncpa [#allocation6], 1 }
 0x1e8   :  { %299 = vsyncpa [#allocation4], 1 }

</bundles_post_ra>
